<compile_context>
chip_gen: v7x
topology: tpu7x:2x2x1
jax: 0.10.0
libtpu: 0.0.40
codegen_flags: <defaults>
</compile_context>

<pallas_src>
import jax
import jax.numpy as jnp
from jax.experimental import pallas as pl
from jax.experimental.pallas import tpu as pltpu


def _rearrange_kernel(x_ref, o_ref):
    # x_ref block: (C, T_HW)   o_ref block: (T_HW, C)
    # Pure 2-D transpose of an (8,128)-tiled slab -> single XLU vxpose.
    o_ref[...] = x_ref[...].T


def _pick_hw_tile(c, hw, dtype_bytes, vmem_budget_bytes=40 * 1024 * 1024):
    """Largest multiple-of-128 divisor of hw whose double-buffered tiles fit VMEM."""
    if hw % 128 != 0:
        # Fall back to a full-axis block (legal: equals the full array dim).
        return hw
    # Live VMEM ~= 2 input buffers (c, t) + 2 output buffers (t, c).
    per_lane_bytes = 4 * c * dtype_bytes
    max_t = max(128, (vmem_budget_bytes // per_lane_bytes) // 128 * 128)
    best = None
    t = 128
    while t <= hw:
        if hw % t == 0 and t <= max_t:
            best = t
        t += 128
    return best if best is not None else hw


def rearrange_b_c_h_w__to__b_hw_c(x):
    """einops.rearrange(x, 'b c h w -> b (h w) c') as a Pallas TPU kernel."""
    b, c, h, w = x.shape
    hw = h * w
    dtype_bytes = jnp.dtype(x.dtype).itemsize

    # Free/contiguous reshape in the wrapper: makes the kernel input lane-dense.
    x2 = x.reshape(b, c, hw)

    t_hw = _pick_hw_tile(c, hw, dtype_bytes)
    n_hw = hw // t_hw

    out_shape = jax.ShapeDtypeStruct((b, hw, c), x.dtype)
    cost = pl.CostEstimate(
        flops=0,
        transcendentals=0,
        bytes_accessed=2 * b * c * hw * dtype_bytes,
    )

    return pl.pallas_call(
        _rearrange_kernel,
        out_shape=out_shape,
        grid_spec=pltpu.PrefetchScalarGridSpec(
            num_scalar_prefetch=0,
            grid=(b, n_hw),
            in_specs=[
                # kernel sees a 2-D (c, t_hw) ref; batch dim squeezed away.
                pl.BlockSpec((pl.Squeezed(), c, t_hw), lambda i, j: (i, 0, j)),
            ],
            out_specs=pl.BlockSpec((pl.Squeezed(), t_hw, c), lambda i, j: (i, j, 0)),
        ),
        compiler_params=pltpu.CompilerParams(
            dimension_semantics=("parallel", "parallel"),
            vmem_limit_bytes=64 << 20,  # raised scoped limit; still v7x-safe
        ),
        cost_estimate=cost,
    )(x2)


if __name__ == "__main__":
    key = jax.random.PRNGKey(0)
    B, C, H, W = 2, 4, 16, 16                      # small NCHW input
    x = jax.random.normal(key, (B, C, H, W), dtype=jnp.float32)

    out = rearrange_b_c_h_w__to__b_hw_c(x)
    out = jax.block_until_ready(out)

    # reference: einops.rearrange(x, 'b c h w -> b (h w) c')
    ref = jnp.transpose(x, (0, 2, 3, 1)).reshape(B, H * W, C)

    assert out.shape == (B, H * W, C), out.shape
    assert out.dtype == x.dtype
    assert jnp.array_equal(out, ref), "mismatch vs reference rearrange"

    print("KERNEL_OK")
</pallas_src>

<mosaic_0001>
module attributes {stable_mosaic.version = 11 : i64} {
  func.func @_rearrange_kernel(%arg0: i32, %arg1: i32, %arg2: memref<1x4x256xf32, #tpu.memory_space<vmem>>, %arg3: memref<1x256x4xf32, #tpu.memory_space<vmem>>) attributes {dimension_semantics = [#tpu.dimension_semantics<parallel>, #tpu.dimension_semantics<parallel>], iteration_bounds = array<i64: 2, 1>, scalar_prefetch = 0 : i64, scratch_operands = 0 : i64, tpu.core_type = #tpu.core_type<tc>, window_params = [{transform_indices = @transform_0, window_bounds = array<i64: 1, 4, 256>}, {transform_indices = @transform_1, window_bounds = array<i64: 1, 256, 4>}]} {
    %c0 = arith.constant 0 : index
    %c0_0 = arith.constant 0 : index
    %c0_1 = arith.constant 0 : index
    %0 = vector.load %arg2[%c0, %c0_0, %c0_1] : memref<1x4x256xf32, #tpu.memory_space<vmem>>, vector<1x4x256xf32>
    %1 = vector.shape_cast %0 : vector<1x4x256xf32> to vector<4x256xf32>
    %2 = tpu.transpose %1, [1, 0] : vector<4x256xf32> -> vector<256x4xf32>
    %c0_2 = arith.constant 0 : index
    %c0_3 = arith.constant 0 : index
    %c0_4 = arith.constant 0 : index
    %3 = vector.load %arg3[%c0_2, %c0_3, %c0_4] : memref<1x256x4xf32, #tpu.memory_space<vmem>>, vector<1x256x4xf32>
    %4 = vector.shape_cast %3 : vector<1x256x4xf32> to vector<256x4xf32>
    %5 = vector.shape_cast %2 : vector<256x4xf32> to vector<1x256x4xf32>
    tpu.vector_store %arg3[%c0_2, %c0_3, %c0_4], %5 {strides = array<i32>} : memref<1x256x4xf32, #tpu.memory_space<vmem>>, vector<1x256x4xf32>,
    return
  }
  func.func @transform_0(%arg0: i32, %arg1: i32) -> (i32, i32, i32) {
    %c0_i32 = arith.constant 0 : i32
    %c0_i32_0 = arith.constant 0 : i32
    return %arg0, %c0_i32, %arg1 : i32, i32, i32
  }
  func.func @transform_1(%arg0: i32, %arg1: i32) -> (i32, i32, i32) {
    %c0_i32 = arith.constant 0 : i32
    %c0_i32_0 = arith.constant 0 : i32
    return %arg0, %arg1, %c0_i32 : i32, i32, i32
  }
}

</mosaic_0001>

<bundles_post_ra>
// kernel: tpu_custom_call.1
= control target key start
LH: loop header
LB: loop body
LE: loop exit
PB: predicated region body
PF: predicated region fallthrough
CT: control target
= control target key end

     0   :  { %6 = vsyncpa [#allocation3], 0  ;;  %s810_s0 = inlined_call_operand.hbm [shape: f32[2,4,256], index: 0, kind: input, shape index: {}]   ;;  %s811_s1 = inlined_call_operand.hbm [shape: f32[2,256,4], index: 1, kind: output, shape index: {}]  }
   0x1   :  { %8 = vsyncpa [#allocation3 + $0x1], 0 }
   0x2   :  { %9 = vsyncpa [#allocation4], 0 }
   0x3   :  { %11 = vsyncpa [#allocation4 + $0x1], 0  ;;  %s568_s6 = smov 0   ;;  %s570_s7 = smov 0  }
   0x4   :  { %s572_s8 = smov 0   ;;  %s574_s9 = smov 0  }
   0x5   :  { %s576_s10 = smov 0   ;;  %s578_s11 = smov 0  }
   0x6 LB: > { %s357_s12 = sadd.s32 4294967295, %s552_s11   ;;  %s358_s13 = sadd.s32 4294967294, %s552_s11   ;;  %s552_s11 = sphi %s578_s11, %s17_s11   ;;  %s548_s10 = sphi %s576_s10, %s827_s10   ;;  %s544_s9 = sphi %s574_s9, %s826_s9   ;;  %s540_s8 = sphi %s572_s8, %s825_s8   ;;  %s536_s7 = sphi %s570_s7, %s824_s7   ;;  %s532_s6 = sphi %s568_s6, %s823_s6  }
   0x7   : > { %s29_s14 = sadd.s32 1, %s548_s10  ;;  %s38_s15 = sadd.s32 1, %s540_s8 }
   0x8   : > { %p31_p0 = scmp.ge.s32.totalorder %s29_s14, 2  ;;  %p45_p1 = scmp.ne.s32.totalorder %s540_s8, %s536_s7 }
   0x9   : > { %p46_p2 = scmp.eq.s32.totalorder %s552_s11, 0  ;;  %p51_p3 = scmp.ne.s32.totalorder %s536_s7, %s532_s6 }
   0xa   : > { %s829_s14 = smov (%p31_p0, %s29_s14), 0  ;;  %p52_p5 = scmp.eq.s32.totalorder %s357_s12, 0 }
   0xb   : > { %p609_p4 = por %p46_p2, %p45_p1  ;;  %s33_s17 = ssub.s32 %s548_s10, %s829_s14 }
   0xc   : > { %p77_p6 = scmp.eq.s32.totalorder %s357_s12, 1  ;;  %p36_p7 = scmp.eq.s32.totalorder %s33_s17, 0 }
   0xd   : > { %p615_p8 = por %p52_p5, %p51_p3  ;;  %p83_p10 = scmp.eq.s32.totalorder %s358_s13, 1 }
   0xe   : > { %p619_p9 = por %p77_p6, %p45_p1  ;;  %p386_p13 = scmp.lt.s32.totalorder %s552_s11, 2 }
   0xf   : > { %s624_s20 = scalar_select %p36_p7, %s540_s8, %s38_s15  }
  0x10   : > { %s815_s19 = scalar_select %p619_p9, 1, 0 }
  0x11   : > { %p626_p11 = por %p83_p10, %p51_p3  ;;  %s103_s22 = sand.u32 1, %s540_s8  }
  0x12   : > { %s361_s23 = sshll.u32 %s103_s22, 3  ;;  %s372_s24 = sshll.u32 %s548_s10, 7 }
  0x13   : > { %s816_s21 = scalar_select %p626_p11, 1, 0 }
  0x14   : > { %s637_s27 = scalar_lea.hbm %s810_s0, %s372_s24  ;;  %s107_s28 = scalar_lea.vmem [#allocation2], %s361_s23 }
  0x15   : > { %s117_s29 = sshll.u32 %s107_s28, 4  ;;  %p643_p0 = pnand %p386_p13, %p609_p4  ;;  %s639_s29 = int_to_ptr.vmem [resolvable:$true] %s117_s29 }
  0x16   : > { %s104_s2 = scalar_lea.sflag [#allocation3], %s103_s22  ;;  %s440_s3 = scalar_lea.hbm %s637_s27, 128 }
  0x17   : > { %p441_p3 = scmp.ne.s32.totalorder %s637_s27, %s440_s3  ;;  %p442_p5 = pneg %p643_p0 }
  0x18   : > { %s445_s12 = scalar_lea.hbm %s810_s0, 256  ;;  %p446_p4 = scmp.lt.u32.totalorder %s637_s27, %s810_s0 }
  0x19   : > { %p443_p6 = pnand %p442_p5, %p441_p3  ;;  %p447_p10 = scmp.lt.u32.totalorder %s445_s12, %s440_s3 }
  0x1a   : > { %p449_p12 = scmp.lt.u32.totalorder %s440_s3, %s637_s27 }
  0x1b   : > { %p444_p7 = pneg %p443_p6  ;;  %p448_p13 = por %p447_p10, %p446_p4 }
  0x1d   : > { %p450_p1 = por %p449_p12, %p448_p13 }
  0x1f   : > { %p451_p2 = pnand %p450_p1, %p444_p7 }
  0x21   : > { %454 = shalt.err (!%p451_p2)
}
  0x22   : > { %s455_s16 = scalar_lea.vmem %s639_s29, 128  ;;  %s554_s17 = smov [#allocation2]  }
  0x23   : > { %p456_p3 = scmp.ne.s32.totalorder %s639_s29, %s455_s16  ;;  %s460_s22 = sshll.u32 %s554_s17, 4  ;;  %s461_s22 = int_to_ptr.vmem [resolvable:$false] %s460_s22 }
  0x24   : > { %s462_s23 = scalar_lea.vmem %s461_s22, 256  ;;  %p463_p9 = scmp.lt.s32.totalorder %s639_s29, %s461_s22 }
  0x25   : > { %p458_p6 = pnand %p456_p3, %p442_p5  ;;  %p464_p4 = scmp.lt.s32.totalorder %s462_s23, %s455_s16 }
  0x27   : > { %p459_p11 = pneg %p458_p6  ;;  %p465_p10 = por %p464_p4, %p463_p9 }
  0x29   : > { %p466_p12 = pnand %p465_p10, %p459_p11 }
  0x2b   : > { %469 = shalt.err (!%p466_p12)
}
  0x2c   : > { %381 = dma.hbm_to_vmem [thread:$0]  (!%p643_p0), %s637_s27, 128, %s639_s29, %s104_s2  }
  0x2d   : > { %p818_p1 = scmp.lt.s32.totalorder %s552_s11, 3  ;;  %p819_p2 = scmp.ge.s32.totalorder %s552_s11, 1 }
  0x2f   : > { %p123_p5 = pnand %p819_p2, %p818_p1 }
  0x30   : > { %s679_s24 = sand.u32 (!%p123_p5), 1, %s536_s7  }
  0x31   : > { %126 = sbr.rel (%p123_p5) target bundleno = 326 (0x146), region = 24  ;;  %s365_s25 = sshll.u32 (!%p123_p5), %s679_s24, 3 }
  0x32   : > { %s129_s26 = scalar_lea.sflag (!%p123_p5), [#allocation3], %s679_s24  ;;  %s132_s28 = scalar_lea.vmem (!%p123_p5), [#allocation2], %s365_s25 }
  0x38   : > { %523 = dma.done.wait (%p615_p8), %s129_s26, 128  }
  0x39   : > { %525 = vsyncadd (%p615_p8), %s129_s26, 4294967168  ;;  %v153_v0 = vld [vmem:[%s132_s28] sm:$0xff]  ;;  %s366_s27 = sshll.u32 %s679_s24, 8  ;;  %vm221_vm0 = vcmask 31744   ;;  %s373_s18 = sshll.u32 %s544_s9, 12 }
  0x3a   : > { %157 = vxpose.xlu0.b32.start.end [1/1] (short) %v153_v0, 128  ;;  %v155_v1 = vcombine.high %v153_v0, %v153_v0  ;;  %s688_s29 = scalar_lea.vmem [#allocation5], %s366_s27  ;;  %s757_s4 = scalar_lea.hbm %s811_s1, %s373_s18 }
  0x3b   : > { %s270_s30 = sshll.u32 %s688_s29, 4  ;;  %s255_s5 = scalar_lea.sflag [#allocation4], %s679_s24  ;;  %s759_s30 = int_to_ptr.vmem [resolvable:$true] %s270_s30 }
  0x3c   : > { %s470_s12 = scalar_lea.vmem %s759_s30, 4096  ;;  %p820_p9 = scmp.ne.s32.totalorder %s815_s19, 0 }
  0x3d   : > { %p471_p8 = scmp.ne.s32.totalorder %s759_s30, %s470_s12  ;;  %s555_s9 = smov [#allocation5]  }
  0x3e   : > { %s474_s13 = sshll.u32 %s555_s9, 4  ;;  %s475_s13 = int_to_ptr.vmem [resolvable:$false] %s474_s13 }
  0x3f   : > { %p472_p11 = pnand %p471_p8, %p820_p9  ;;  %s476_s15 = scalar_lea.vmem %s475_s13, 8192 }
  0x40   : > { %p477_p7 = scmp.lt.s32.totalorder %s759_s30, %s475_s13  ;;  %p478_p13 = scmp.lt.s32.totalorder %s476_s15, %s470_s12 }
  0x41   : > { %p473_p0 = pneg %p472_p11 }
  0x42   : > { %p479_p3 = por %p478_p13, %p477_p7 }
  0x44   : > { %p480_p6 = pnand %p479_p3, %p473_p0 }
  0x77   : > { %189 = vxpose.xlu0.b32.start.end [1/1] (short) %v155_v1, 128 }
  0xba   : > { %v173_v2 = vpop.trf.xlu0 }
  0xbb   : > { %222 = vst.msk [vmem:[%s688_s29] sm:$0xff] %vm221_vm0, %v173_v2 }
  0xbe   : > { %v174_v3 = vpop.trf.xlu0 }
  0xbf   : > { %223 = vst.msk [vmem:[%s688_s29 + $0x8] sm:$0xff] %vm221_vm0, %v174_v3 }
  0xc2   : > { %v175_v4 = vpop.trf.xlu0 }
  0xc3   : > { %224 = vst.msk [vmem:[%s688_s29 + $0x10] sm:$0xff] %vm221_vm0, %v175_v4 }
  0xc6   : > { %v176_v5 = vpop.trf.xlu0 }
  0xc7   : > { %225 = vst.msk [vmem:[%s688_s29 + $0x18] sm:$0xff] %vm221_vm0, %v176_v5 }
  0xca   : > { %v177_v6 = vpop.trf.xlu0 }
  0xcb   : > { %226 = vst.msk [vmem:[%s688_s29 + $0x20] sm:$0xff] %vm221_vm0, %v177_v6 }
  0xce   : > { %v178_v7 = vpop.trf.xlu0 }
  0xcf   : > { %227 = vst.msk [vmem:[%s688_s29 + $0x28] sm:$0xff] %vm221_vm0, %v178_v7 }
  0xd2   : > { %v179_v8 = vpop.trf.xlu0 }
  0xd3   : > { %228 = vst.msk [vmem:[%s688_s29 + $0x30] sm:$0xff] %vm221_vm0, %v179_v8 }
  0xd6   : > { %v180_v9 = vpop.trf.xlu0 }
  0xd7   : > { %229 = vst.msk [vmem:[%s688_s29 + $0x38] sm:$0xff] %vm221_vm0, %v180_v9 }
  0xda   : > { %v181_v10 = vpop.trf.xlu0 }
  0xdb   : > { %230 = vst.msk [vmem:[%s688_s29 + $0x40] sm:$0xff] %vm221_vm0, %v181_v10 }
  0xde   : > { %v182_v11 = vpop.trf.xlu0 }
  0xdf   : > { %231 = vst.msk [vmem:[%s688_s29 + $0x48] sm:$0xff] %vm221_vm0, %v182_v11 }
  0xe2   : > { %v183_v12 = vpop.trf.xlu0 }
  0xe3   : > { %232 = vst.msk [vmem:[%s688_s29 + $0x50] sm:$0xff] %vm221_vm0, %v183_v12 }
  0xe6   : > { %v184_v13 = vpop.trf.xlu0 }
  0xe7   : > { %233 = vst.msk [vmem:[%s688_s29 + $0x58] sm:$0xff] %vm221_vm0, %v184_v13 }
  0xea   : > { %v185_v14 = vpop.trf.xlu0 }
  0xeb   : > { %234 = vst.msk [vmem:[%s688_s29 + $0x60] sm:$0xff] %vm221_vm0, %v185_v14 }
  0xee   : > { %v186_v15 = vpop.trf.xlu0 }
  0xef   : > { %235 = vst.msk [vmem:[%s688_s29 + $0x68] sm:$0xff] %vm221_vm0, %v186_v15 }
  0xf2   : > { %v187_v16 = vpop.trf.xlu0 }
  0xf3   : > { %236 = vst.msk [vmem:[%s688_s29 + $0x70] sm:$0xff] %vm221_vm0, %v187_v16 }
  0xf6   : > { %v188_v17 = vpop.trf.xlu0 }
  0xf7   : > { %237 = vst.msk [vmem:[%s688_s29 + $0x78] sm:$0xff] %vm221_vm0, %v188_v17 }
  0xfa   : > { %v205_v18 = vpop.trf.xlu0 }
  0xfb   : > { %238 = vst.msk [vmem:[%s688_s29 + $0x80] sm:$0xff] %vm221_vm0, %v205_v18 }
  0xfe   : > { %v206_v19 = vpop.trf.xlu0 }
  0xff   : > { %239 = vst.msk [vmem:[%s688_s29 + $0x88] sm:$0xff] %vm221_vm0, %v206_v19 }
 0x102   : > { %v207_v20 = vpop.trf.xlu0 }
 0x103   : > { %240 = vst.msk [vmem:[%s688_s29 + $0x90] sm:$0xff] %vm221_vm0, %v207_v20 }
 0x106   : > { %v208_v21 = vpop.trf.xlu0 }
 0x107   : > { %241 = vst.msk [vmem:[%s688_s29 + $0x98] sm:$0xff] %vm221_vm0, %v208_v21 }
 0x10a   : > { %v209_v22 = vpop.trf.xlu0 }
 0x10b   : > { %242 = vst.msk [vmem:[%s688_s29 + $0xa0] sm:$0xff] %vm221_vm0, %v209_v22 }
 0x10e   : > { %v210_v23 = vpop.trf.xlu0 }
 0x10f   : > { %243 = vst.msk [vmem:[%s688_s29 + $0xa8] sm:$0xff] %vm221_vm0, %v210_v23 }
 0x112   : > { %v211_v24 = vpop.trf.xlu0 }
 0x113   : > { %244 = vst.msk [vmem:[%s688_s29 + $0xb0] sm:$0xff] %vm221_vm0, %v211_v24 }
 0x116   : > { %v212_v25 = vpop.trf.xlu0 }
 0x117   : > { %245 = vst.msk [vmem:[%s688_s29 + $0xb8] sm:$0xff] %vm221_vm0, %v212_v25 }
 0x11a   : > { %v213_v26 = vpop.trf.xlu0 }
 0x11b   : > { %246 = vst.msk [vmem:[%s688_s29 + $0xc0] sm:$0xff] %vm221_vm0, %v213_v26 }
 0x11e   : > { %v214_v27 = vpop.trf.xlu0 }
 0x11f   : > { %247 = vst.msk [vmem:[%s688_s29 + $0xc8] sm:$0xff] %vm221_vm0, %v214_v27 }
 0x122   : > { %v215_v28 = vpop.trf.xlu0 }
 0x123   : > { %248 = vst.msk [vmem:[%s688_s29 + $0xd0] sm:$0xff] %vm221_vm0, %v215_v28 }
 0x126   : > { %v216_v29 = vpop.trf.xlu0 }
 0x127   : > { %249 = vst.msk [vmem:[%s688_s29 + $0xd8] sm:$0xff] %vm221_vm0, %v216_v29 }
 0x12a   : > { %v217_v30 = vpop.trf.xlu0 }
 0x12b   : > { %250 = vst.msk [vmem:[%s688_s29 + $0xe0] sm:$0xff] %vm221_vm0, %v217_v30 }
 0x12e   : > { %v218_v31 = vpop.trf.xlu0 }
 0x12f   : > { %251 = vst.msk [vmem:[%s688_s29 + $0xe8] sm:$0xff] %vm221_vm0, %v218_v31 }
 0x132   : > { %v219_v32 = vpop.trf.xlu0 }
 0x133   : > { %252 = vst.msk [vmem:[%s688_s29 + $0xf0] sm:$0xff] %vm221_vm0, %v219_v32 }
 0x136   : > { %v220_v33 = vpop.trf.xlu0 }
 0x137   : > { %253 = vst.msk [vmem:[%s688_s29 + $0xf8] sm:$0xff] %vm221_vm0, %v220_v33 }
 0x138   : > { %483 = shalt.err (!%p480_p6)
}
 0x139   : > { %s484_s16 = scalar_lea.hbm %s757_s4, 4096  ;;  %s488_s23 = scalar_lea.hbm %s811_s1, 8192 }
 0x13a   : > { %p485_p4 = scmp.ne.s32.totalorder %s757_s4, %s484_s16  ;;  %p489_p1 = scmp.lt.u32.totalorder %s757_s4, %s811_s1 }
 0x13b   : > { %p490_p2 = scmp.lt.u32.totalorder %s488_s23, %s484_s16  ;;  %p492_p8 = scmp.lt.u32.totalorder %s484_s16, %s757_s4 }
 0x13c   : > { %p486_p10 = pnand %p485_p4, %p820_p9 }
 0x13d   : > { %p491_p5 = por %p490_p2, %p489_p1 }
 0x13e   : > { %p487_p12 = pneg %p486_p10 }
 0x13f   : > { %p493_p11 = por %p492_p8, %p491_p5 }
 0x141   : > { %p494_p0 = pnand %p493_p11, %p487_p12 }
 0x143   : > { %497 = shalt.err (!%p494_p0)
}
 0x144   : > { %s556_s28 = smov 128   ;;  %s557_s27 = smov 8  }
 0x145   : > { %376 = dma.vmem_to_hbm [thread:$0]  (%p820_p9), %s759_s30, 4096, %s757_s4, %s255_s5, %s556_s28, %s556_s28, %s557_s27  }
 0x146 PF: > { %s285_s29 = sand.u32 1, %s532_s6   ;;  %p821_p7 = scmp.ne.s32.totalorder %s816_s21, 0 }
 0x147   : > { %p822_p13 = scmp.ge.s32.totalorder %s552_s11, 2  ;;  %s286_s18 = scalar_lea.sflag [#allocation4], %s285_s29 }
 0x149   : > { %p383_p3 = pnand %p822_p13, %p821_p7 }
 0x14b   : > { %527 = dma.done.wait (!%p383_p3), %s286_s18, 4096  }
 0x14c   : > { %529 = vsyncadd (!%p383_p3), %s286_s18, 4294963200  ;;  %s17_s11 = sadd.s32 1, %s552_s11   ;;  %s823_s6 = smov %s536_s7 }
 0x14d   : > { %p14_p6 = scmp.ge.s32.totalorder %s17_s11, 4   ;;  %s824_s7 = smov %s540_s8 }
 0x14e   : > { %s825_s8 = smov %s624_s20  ;;  %s826_s9 = smov %s548_s10 }
 0x14f   : > { %s827_s10 = smov %s829_s14  ;;  %16 = sbr.rel (!%p14_p6) target bundleno = 6 (0x6), region = 69 }
 0x156   :  { %291 = vsyncpa [#allocation3], 1 }
 0x157   :  { %293 = vsyncpa [#allocation3 + $0x1], 1 }
 0x158   :  { %294 = vsyncpa [#allocation4], 1 }
 0x159   :  { %296 = vsyncpa [#allocation4 + $0x1], 1 }

</bundles_post_ra>
